<compile_context>
chip_gen: v7x
topology: tpu7x:2x2x1
jax: 0.10.0
libtpu: 0.0.40
codegen_flags: <defaults>
</compile_context>

<pallas_src>
import functools
import math

import jax
import jax.numpy as jnp
from jax import lax
from jax.experimental import pallas as pl
from jax.experimental.pallas import tpu as pltpu


def _round_up(n, m):
    return ((n + m - 1) // m) * m


def _gumbel_sigmoid_kernel(params_ref, x_ref, u_ref, o_ref, *, hard):
    # params_ref (SMEM via scalar prefetch): [inv_t, threshold] as f32.
    inv_t = params_ref[0]
    threshold = params_ref[1]

    # torch: g = -log(exponential_()) = -log(-log(u)),  u ~ Uniform(0, 1) open.
    u = u_ref[...]
    g = -jnp.log(-jnp.log(u))

    x = x_ref[...].astype(jnp.float32)
    z = (x + g) * inv_t

    # sigmoid(z) == 0.5 * (1 + tanh(z / 2)): single EUP op instead of exp + divide.
    y_soft = 0.5 * (jnp.tanh(0.5 * z) + 1.0)

    if hard:
        y_hard = jnp.where(y_soft > threshold, 1.0, 0.0)
        # Straight-through combine; forward value is exactly y_hard.
        out = y_hard + (y_soft - lax.stop_gradient(y_soft))
    else:
        out = y_soft
    o_ref[...] = out.astype(o_ref.dtype)


def gumbel_sigmoid_pallas(x, key, *, t=0.5, threshold=0.5, hard=True,
                          lane_width=512, target_block_rows=512):
    """Forward pass of straight-through Gumbel-Sigmoid (any input shape)."""
    orig_shape = x.shape
    n = x.size
    W = lane_width
    # bf16 inputs pack 16 rows per sublane group; f32 packs 8.
    sub = 16 if jnp.dtype(x.dtype).itemsize == 2 else 8

    rows = _round_up(-(-n // W), sub)           # ceil(n / W), sublane aligned
    block_rows = min(target_block_rows, rows)   # ~1 MiB f32 tile at defaults
    grid = -(-rows // block_rows)
    rows_padded = grid * block_rows
    n_padded = rows_padded * W

    xf = x.reshape(-1)
    if n_padded != n:
        xf = jnp.pad(xf, (0, n_padded - n))
    x2 = xf.reshape(rows_padded, W)

    # Uniform noise in the strictly open interval (0, 1) so both logs are finite.
    tiny = jnp.finfo(jnp.float32).tiny
    u = jax.random.uniform(key, (rows_padded, W), dtype=jnp.float32,
                           minval=tiny, maxval=1.0)

    # Runtime scalars: annealing t does not force a recompile.
    params = jnp.array([1.0 / float(t), float(threshold)], dtype=jnp.float32)

    kernel = functools.partial(_gumbel_sigmoid_kernel, hard=bool(hard))
    out2 = pl.pallas_call(
        kernel,
        out_shape=jax.ShapeDtypeStruct((rows_padded, W), x.dtype),
        grid_spec=pltpu.PrefetchScalarGridSpec(
            num_scalar_prefetch=1,
            grid=(grid,),
            in_specs=[pl.BlockSpec((block_rows, W), lambda i, p: (i, 0)),
                      pl.BlockSpec((block_rows, W), lambda i, p: (i, 0))],
            out_specs=pl.BlockSpec((block_rows, W), lambda i, p: (i, 0)),
        ),
        compiler_params=pltpu.CompilerParams(
            dimension_semantics=("parallel",),  # shard grid across v7x's 2 TCs
        ),
    )(params, x2, u)

    return out2.reshape(-1)[:n].reshape(orig_shape)


class GumbelSigmoid:
    """Mirrors the PyTorch GumbelSigmoid hyperparameters; annealing is host-side."""

    # TODO(synk): pallas_call is not transparently differentiable; if the ST
    # gradient estimator is needed for training, wrap gumbel_sigmoid_pallas in
    # jax.custom_vjp with the intended backward.
    def __init__(self, t=0.5, eps=1e-20, hard=True, threshold=0.5,
                 rate=0.0001, step=1000, min_val=0.5):
        self.t = float(t)
        self.eps = eps          # unused (also unused in the torch reference)
        self.hard = hard
        self.threshold = threshold
        self.rate = rate
        self.step = step
        self.min_val = min_val

    def __call__(self, x, key, iteration=None):
        if iteration and iteration % self.step == 0:
            self.t = max(math.exp(-self.rate * iteration), self.min_val)
        return gumbel_sigmoid_pallas(
            x, key, t=self.t, threshold=self.threshold, hard=self.hard
        )


if __name__ == "__main__":
    root = jax.random.PRNGKey(0)
    kx, knoise = jax.random.split(root)
    B, F = 16, 256   # small (batch, features), matching the 2-D torch forward
    x = jax.random.normal(kx, (B, F), dtype=jnp.float32)

    # hard (straight-through) path: forward values must be exactly {0, 1}
    module = GumbelSigmoid(t=0.5, hard=True, threshold=0.5)
    y = jax.block_until_ready(module(x, knoise))
    assert y.shape == (B, F)
    assert bool(jnp.all((y == 0.0) | (y == 1.0)))

    # soft path: valid probabilities
    module_soft = GumbelSigmoid(t=0.5, hard=False)
    y_soft = jax.block_until_ready(module_soft(x, knoise))
    assert y_soft.shape == (B, F)
    assert bool(jnp.all((y_soft >= 0.0) & (y_soft <= 1.0)))

    print("KERNEL_OK")
</pallas_src>

<mosaic_0001>
module attributes {stable_mosaic.version = 11 : i64} {
  func.func @_gumbel_sigmoid_kernel(%arg0: i32, %arg1: memref<2xf32, #tpu.memory_space<smem>>, %arg2: memref<8x512xf32, #tpu.memory_space<vmem>>, %arg3: memref<8x512xf32, #tpu.memory_space<vmem>>, %arg4: memref<8x512xf32, #tpu.memory_space<vmem>>) attributes {dimension_semantics = [#tpu.dimension_semantics<parallel>], iteration_bounds = array<i64: 1>, scalar_prefetch = 1 : i64, scratch_operands = 0 : i64, tpu.core_type = #tpu.core_type<tc>, window_params = [{transform_indices = @transform_0, window_bounds = array<i64: 8, 512>}, {transform_indices = @transform_1, window_bounds = array<i64: 8, 512>}, {transform_indices = @transform_2, window_bounds = array<i64: 8, 512>}]} {
    %c0 = arith.constant 0 : index
    %0 = memref.load %arg1[%c0] : memref<2xf32, #tpu.memory_space<smem>>
    %c1 = arith.constant 1 : index
    %1 = memref.load %arg1[%c1] : memref<2xf32, #tpu.memory_space<smem>>
    %c0_0 = arith.constant 0 : index
    %c0_1 = arith.constant 0 : index
    %2 = vector.load %arg3[%c0_0, %c0_1] : memref<8x512xf32, #tpu.memory_space<vmem>>, vector<8x512xf32>
    %3 = math.log %2 : vector<8x512xf32>
    %cst = arith.constant 0.000000e+00 : f32
    %4 = vector.broadcast %cst : f32 to vector<8x512xf32>
    %5 = arith.subf %4, %3 : vector<8x512xf32>
    %6 = math.log %5 : vector<8x512xf32>
    %cst_2 = arith.constant 0.000000e+00 : f32
    %7 = vector.broadcast %cst_2 : f32 to vector<8x512xf32>
    %8 = arith.subf %7, %6 : vector<8x512xf32>
    %c0_3 = arith.constant 0 : index
    %c0_4 = arith.constant 0 : index
    %9 = vector.load %arg2[%c0_3, %c0_4] : memref<8x512xf32, #tpu.memory_space<vmem>>, vector<8x512xf32>
    %10 = arith.addf %9, %8 : vector<8x512xf32>
    %11 = vector.broadcast %0 : f32 to vector<8x512xf32>
    %12 = arith.mulf %10, %11 : vector<8x512xf32>
    %cst_5 = arith.constant 5.000000e-01 : f32
    %13 = vector.broadcast %cst_5 : f32 to vector<8x512xf32>
    %14 = arith.mulf %13, %12 : vector<8x512xf32>
    %15 = math.tanh %14 : vector<8x512xf32>
    %cst_6 = arith.constant 1.000000e+00 : f32
    %16 = vector.broadcast %cst_6 : f32 to vector<8x512xf32>
    %17 = arith.addf %15, %16 : vector<8x512xf32>
    %cst_7 = arith.constant 5.000000e-01 : f32
    %18 = vector.broadcast %cst_7 : f32 to vector<8x512xf32>
    %19 = arith.mulf %18, %17 : vector<8x512xf32>
    %20 = vector.broadcast %1 : f32 to vector<8x512xf32>
    %21 = arith.cmpf ogt, %19, %20 : vector<8x512xf32>
    %cst_8 = arith.constant 1.000000e+00 : f32
    %cst_9 = arith.constant 0.000000e+00 : f32
    %22 = vector.broadcast %cst_8 : f32 to vector<8x512xf32>
    %23 = vector.broadcast %cst_9 : f32 to vector<8x512xf32>
    %24 = arith.select %21, %22, %23 : vector<8x512xi1>, vector<8x512xf32>
    %25 = arith.subf %19, %19 : vector<8x512xf32>
    %26 = arith.addf %24, %25 : vector<8x512xf32>
    %c0_10 = arith.constant 0 : index
    %c0_11 = arith.constant 0 : index
    %27 = vector.load %arg4[%c0_10, %c0_11] : memref<8x512xf32, #tpu.memory_space<vmem>>, vector<8x512xf32>
    tpu.vector_store %arg4[%c0_10, %c0_11], %26 {strides = array<i32>} : memref<8x512xf32, #tpu.memory_space<vmem>>, vector<8x512xf32>,
    return
  }
  func.func @transform_0(%arg0: i32, %arg1: memref<2xf32, #tpu.memory_space<smem>>) -> (i32, i32) {
    %c0_i32 = arith.constant 0 : i32
    %c0_i32_0 = arith.constant 0 : i32
    return %arg0, %c0_i32 : i32, i32
  }
  func.func @transform_1(%arg0: i32, %arg1: memref<2xf32, #tpu.memory_space<smem>>) -> (i32, i32) {
    %c0_i32 = arith.constant 0 : i32
    %c0_i32_0 = arith.constant 0 : i32
    return %arg0, %c0_i32 : i32, i32
  }
  func.func @transform_2(%arg0: i32, %arg1: memref<2xf32, #tpu.memory_space<smem>>) -> (i32, i32) {
    %c0_i32 = arith.constant 0 : i32
    %c0_i32_0 = arith.constant 0 : i32
    return %arg0, %c0_i32 : i32, i32
  }
}

</mosaic_0001>

<bundles_post_ra>
// kernel: tpu_custom_call.1
= control target key start
LH: loop header
LB: loop body
LE: loop exit
PB: predicated region body
PF: predicated region fallthrough
CT: control target
= control target key end

     0   :  { %s324_s0 = inlined_call_operand.hbm [shape: f32[2], index: 0, kind: input, shape index: {}]   ;;  %s325_s1 = inlined_call_operand.hbm [shape: f32[8,512], index: 1, kind: input, shape index: {}]   ;;  %s326_s2 = inlined_call_operand.hbm [shape: f32[8,512], index: 2, kind: input, shape index: {}]   ;;  %s327_s3 = inlined_call_operand.hbm [shape: f32[8,512], index: 3, kind: output, shape index: {}]  }
   0x1   :  { %s167_s14 = scalar_lea.hbm %s324_s0, 16 }
   0x2   :  { %p168_p0 = scmp.ne.s32.totalorder %s324_s0, %s167_s14  ;;  %p171_p1 = scmp.lt.u32.totalorder %s167_s14, %s324_s0 }
   0x4   :  { %p173_p2 = pnand %p171_p1, %p168_p0 }
   0x6   :  { %176 = shalt.err (!%p173_p2)  }
   0x7   :  { %s251_s19 = smov [#allocation3]  }
   0x8   :  { %9 = dma.hbm_to_smem %s324_s0, 16, %s251_s19, [#allocation2] }
   0x9   :  { %243 = dma.done.wait [#allocation2], 16 }
   0xa   :  { %244 = vsyncadd [#allocation2], 4294967280 }
   0xb   :  { %11 = sfence }
   0xc   :  { %12 = vsyncpa [#allocation5], 0 }
   0xd   :  { %13 = vsyncpa [#allocation8], 0 }
   0xe   :  { %14 = vsyncpa [#allocation6], 0  ;;  %s252_s22 = smov [#allocation4]   ;;  %s253_s24 = smov [#allocation7]  }
   0xf   :  { %s21_s23 = sshll.u32 %s252_s22, 4  ;;  %s31_s25 = sshll.u32 %s253_s24, 4  ;;  %s22_s23 = int_to_ptr.vmem [resolvable:$true] %s21_s23  ;;  %s32_s25 = int_to_ptr.vmem [resolvable:$true] %s31_s25 }
  0x10   :  { %s177_s28 = scalar_lea.hbm %s325_s1, 512 }
  0x11   :  { %p178_p3 = scmp.ne.s32.totalorder %s325_s1, %s177_s28  ;;  %p181_p4 = scmp.lt.u32.totalorder %s177_s28, %s325_s1 }
  0x13   :  { %p183_p5 = pnand %p181_p4, %p178_p3 }
  0x15   :  { %186 = shalt.err (!%p183_p5)
}
  0x16   :  { %s187_s5 = scalar_lea.vmem %s22_s23, 512  ;;  %p192_p7 = scmp.lt.s32.totalorder %s22_s23, %s22_s23 }
  0x17   :  { %p188_p6 = scmp.ne.s32.totalorder %s22_s23, %s187_s5  ;;  %p193_p8 = scmp.lt.s32.totalorder %s187_s5, %s187_s5 }
  0x19   :  { %p194_p9 = por %p193_p8, %p192_p7 }
  0x1b   :  { %p195_p10 = pnand %p194_p9, %p188_p6 }
  0x1d   :  { %198 = shalt.err (!%p195_p10)
}
  0x1e   :  { %24 = dma.hbm_to_vmem [thread:$0]  %s325_s1, 512, %s22_s23, [#allocation5]  }
  0x1f   :  { %s199_s10 = scalar_lea.hbm %s326_s2, 512 }
  0x20   :  { %p200_p11 = scmp.ne.s32.totalorder %s326_s2, %s199_s10  ;;  %p203_p12 = scmp.lt.u32.totalorder %s199_s10, %s326_s2 }
  0x22   :  { %p205_p13 = pnand %p203_p12, %p200_p11 }
  0x24   :  { %208 = shalt.err (!%p205_p13)
}
  0x25   :  { %s209_s15 = scalar_lea.vmem %s32_s25, 512  ;;  %p214_p1 = scmp.lt.s32.totalorder %s32_s25, %s32_s25 }
  0x26   :  { %p210_p0 = scmp.ne.s32.totalorder %s32_s25, %s209_s15  ;;  %p215_p2 = scmp.lt.s32.totalorder %s209_s15, %s209_s15 }
  0x28   :  { %p216_p3 = por %p215_p2, %p214_p1 }
  0x2a   :  { %p217_p4 = pnand %p216_p3, %p210_p0 }
  0x2c   :  { %220 = shalt.err (!%p217_p4)
}
  0x2d   :  { %34 = dma.hbm_to_vmem [thread:$0]  %s326_s2, 512, %s32_s25, [#allocation8]  }
  0x2e   :  { %245 = dma.done.wait [#allocation5], 512  }
  0x2f   :  { %246 = vsyncadd [#allocation5], 4294966784 }
  0x30   :  { %247 = dma.done.wait [#allocation8], 512  }
  0x31   :  { %248 = vsyncadd [#allocation8], 4294966784  ;;  %v43_v0 = vld [vmem:[#allocation7] sm:$0xff]  ;;  %v44_v1 = vld [vmem:[#allocation7 + $0x8] sm:$0xff]  ;;  %s41_s2 = sld [smem:[#allocation3]]  ;;  %s137_s17 = sld [smem:[#allocation3 + $0x1]] }
  0x32   :  { %143 = vlog2.f32 %v43_v0  ;;  %v45_v2 = vld [vmem:[#allocation7 + $0x10] sm:$0xff]  ;;  %v46_v3 = vld [vmem:[#allocation7 + $0x18] sm:$0xff]  ;;  %v71_v20 = vld [vmem:[#allocation4] sm:$0xff]  ;;  %v254_v58 = vmov 0.0   ;;  %s255_s18 = smov [#allocation9]  }
  0x33   :  { %145 = vlog2.f32 %v44_v1  ;;  %v72_v24 = vld [vmem:[#allocation4 + $0x8] sm:$0xff]  ;;  %v73_v28 = vld [vmem:[#allocation4 + $0x10] sm:$0xff]  ;;  %v74_v32 = vld [vmem:[#allocation4 + $0x18] sm:$0xff]  ;;  %s127_s19 = sshll.u32 %s255_s18, 4  ;;  %s128_s19 = int_to_ptr.vmem [resolvable:$true] %s127_s19 }
  0x34   :  { %147 = vlog2.f32 %v45_v2  ;;  %s221_s20 = scalar_lea.vmem %s128_s19, 512  ;;  %p226_p6 = scmp.lt.s32.totalorder %s128_s19, %s128_s19 }
  0x35   :  { %149 = vlog2.f32 %v46_v3  ;;  %p222_p5 = scmp.ne.s32.totalorder %s128_s19, %s221_s20  ;;  %p227_p7 = scmp.lt.s32.totalorder %s221_s20, %s221_s20 }
  0x37   :  { %v79_v26 = vstv %s41_s2  ;;  %v100_v49 = vstv %s137_s17  ;;  %p228_p8 = por %p227_p7, %p226_p6 }
  0x39   :  { %p229_p9 = pnand %p228_p8, %p222_p5 }
  0x3c   :  { %v144_v4 = vpop.eup %143 }
  0x3d   :  { %v146_v5 = vpop.eup %145  ;;  %v48_v6 = vmul.f32 0.6931472, %v144_v4 }
  0x3e   :  { %v148_v7 = vpop.eup %147  ;;  %v50_v8 = vmul.f32 0.6931472, %v146_v5 }
  0x3f   :  { %v150_v9 = vpop.eup %149  ;;  %v55_v10 = vsub.f32 0.0, %v48_v6  ;;  %v52_v11 = vmul.f32 0.6931472, %v148_v7 }
  0x40   :  { %v56_v12 = vsub.f32 0.0, %v50_v8  ;;  %v54_v13 = vmul.f32 0.6931472, %v150_v9 }
  0x41   :  { %151 = vlog2.f32 %v55_v10  ;;  %v57_v14 = vsub.f32 0.0, %v52_v11 }
  0x42   :  { %153 = vlog2.f32 %v56_v12  ;;  %v58_v15 = vsub.f32 0.0, %v54_v13 }
  0x43   :  { %155 = vlog2.f32 %v57_v14 }
  0x44   :  { %157 = vlog2.f32 %v58_v15 }
  0x4b   :  { %v152_v16 = vpop.eup %151 }
  0x4c   :  { %v154_v17 = vpop.eup %153  ;;  %v60_v18 = vmul.f32 0.6931472, %v152_v16 }
  0x4d   :  { %v156_v19 = vpop.eup %155  ;;  %v62_v21 = vmul.f32 0.6931472, %v154_v17 }
  0x4e   :  { %v158_v22 = vpop.eup %157  ;;  %v67_v23 = vsub.f32 0.0, %v60_v18  ;;  %v64_v25 = vmul.f32 0.6931472, %v156_v19 }
  0x4f   :  { %v68_v27 = vsub.f32 0.0, %v62_v21  ;;  %v66_v29 = vmul.f32 0.6931472, %v158_v22 }
  0x50   :  { %v75_v30 = vadd.f32 %v71_v20, %v67_v23  ;;  %v69_v31 = vsub.f32 0.0, %v64_v25 }
  0x51   :  { %v76_v33 = vadd.f32 %v72_v24, %v68_v27  ;;  %v70_v34 = vsub.f32 0.0, %v66_v29 }
  0x52   :  { %v80_v35 = vmul.f32 %v79_v26, %v75_v30  ;;  %v77_v36 = vadd.f32 %v73_v28, %v69_v31 }
  0x53   :  { %v81_v37 = vmul.f32 %v79_v26, %v76_v33  ;;  %v78_v38 = vadd.f32 %v74_v32, %v70_v34 }
  0x54   :  { %v84_v39 = vmul.f32 0.5, %v80_v35  ;;  %v82_v40 = vmul.f32 %v79_v26, %v77_v36 }
  0x55   :  { %v85_v41 = vmul.f32 0.5, %v81_v37  ;;  %v83_v42 = vmul.f32 %v79_v26, %v78_v38 }
  0x56   :  { %159 = vtanh.f32 %v84_v39  ;;  %v86_v43 = vmul.f32 0.5, %v82_v40 }
  0x57   :  { %161 = vtanh.f32 %v85_v41  ;;  %v87_v44 = vmul.f32 0.5, %v83_v42 }
  0x58   :  { %163 = vtanh.f32 %v86_v43 }
  0x59   :  { %165 = vtanh.f32 %v87_v44 }
  0x60   :  { %v160_v45 = vpop.eup %159 }
  0x61   :  { %v162_v46 = vpop.eup %161  ;;  %v92_v47 = vadd.f32 1.0, %v160_v45 }
  0x62   :  { %v164_v48 = vpop.eup %163  ;;  %v93_v50 = vadd.f32 1.0, %v162_v46 }
  0x63   :  { %v166_v51 = vpop.eup %165  ;;  %v96_v52 = vmul.f32 0.5, %v92_v47  ;;  %v94_v53 = vadd.f32 1.0, %v164_v48 }
  0x64   :  { %v97_v54 = vmul.f32 0.5, %v93_v50  ;;  %v95_v55 = vadd.f32 1.0, %v166_v51 }
  0x65   :  { %vm101_vm0 = vcmp.gt.f32.partialorder %v96_v52, %v100_v49  ;;  %v109_v56 = vsub.f32 %v96_v52, %v96_v52  ;;  %v98_v57 = vmul.f32 0.5, %v94_v53 }
  0x66   :  { %v105_v59 = vsel %vm101_vm0, 1.0, %v254_v58  ;;  %vm102_vm1 = vcmp.gt.f32.partialorder %v97_v54, %v100_v49  ;;  %v110_v60 = vsub.f32 %v97_v54, %v97_v54  ;;  %v99_v61 = vmul.f32 0.5, %v95_v55 }
  0x67   :  { %v113_v62 = vadd.f32 %v109_v56, %v105_v59  ;;  %v106_v63 = vsel %vm102_vm1, 1.0, %v254_v58  ;;  %vm103_vm2 = vcmp.gt.f32.partialorder %v98_v57, %v100_v49  ;;  %v111_v0 = vsub.f32 %v98_v57, %v98_v57 }
  0x68   :  { %v114_v1 = vadd.f32 %v110_v60, %v106_v63  ;;  %v107_v2 = vsel %vm103_vm2, 1.0, %v254_v58  ;;  %vm104_vm3 = vcmp.gt.f32.partialorder %v99_v61, %v100_v49  ;;  %v112_v3 = vsub.f32 %v99_v61, %v99_v61 }
  0x69   :  { %117 = vst [vmem:[#allocation9] sm:$0xff] %v113_v62  ;;  %v115_v4 = vadd.f32 %v111_v0, %v107_v2  ;;  %v108_v5 = vsel %vm104_vm3, 1.0, %v254_v58 }
  0x6a   :  { %118 = vst [vmem:[#allocation9 + $0x8] sm:$0xff] %v114_v1  ;;  %v116_v6 = vadd.f32 %v112_v3, %v108_v5 }
  0x6b   :  { %119 = vst [vmem:[#allocation9 + $0x10] sm:$0xff] %v115_v4 }
  0x6c   :  { %120 = vst [vmem:[#allocation9 + $0x18] sm:$0xff] %v116_v6 }
  0x6d   :  { %232 = shalt.err (!%p229_p9)
}
  0x6e   :  { %s233_s23 = scalar_lea.hbm %s327_s3, 512 }
  0x6f   :  { %p234_p10 = scmp.ne.s32.totalorder %s327_s3, %s233_s23  ;;  %p237_p11 = scmp.lt.u32.totalorder %s233_s23, %s327_s3 }
  0x71   :  { %p239_p12 = pnand %p237_p11, %p234_p10 }
  0x73   :  { %242 = shalt.err (!%p239_p12)
}
  0x74   :  { %130 = dma.vmem_to_hbm [thread:$0]  %s128_s19, 512, %s327_s3, [#allocation6]  }
  0x75   :  { %249 = dma.done.wait [#allocation6], 512  }
  0x76   :  { %250 = vsyncadd [#allocation6], 4294966784 }
  0x77   :  { %134 = vsyncpa [#allocation5], 1 }
  0x78   :  { %135 = vsyncpa [#allocation8], 1 }
  0x79   :  { %136 = vsyncpa [#allocation6], 1 }

</bundles_post_ra>
